<compile_context>
chip_gen: v7x
topology: tpu7x:2x2x1
jax: 0.10.0
libtpu: 0.0.40
codegen_flags: <defaults>
</compile_context>

<pallas_src>
import functools

import jax
import jax.numpy as jnp
from jax.experimental import pallas as pl
from jax.experimental.pallas import tpu as pltpu


def _round_up(a, m):
    return (a + m - 1) // m * m


def _dila_conv1_kernel(xa_ref, xb_ref, w_ref, b_ref, o_ref, *, dilation,
                       kernel_size):
    """One grid step = one T_out tile, all batch elements.

    xa_ref: (B, t_tile, C_in)   main input tile                (VMEM)
    xb_ref: (B, h_blk,  C_in)   dilation halo rows             (VMEM)
    w_ref : (K*C_in, C_out)     weights, tap-major rows        (VMEM, resident)
    b_ref : (1, C_out)          bias                           (VMEM, resident)
    o_ref : (t_tile, B*C_out)   time-major output slab         (VMEM)
    """
    b_sz, t_tile, _ = xa_ref.shape
    outs = []
    for b in range(b_sz):                              # static unroll, B small
        # (t_tile + h_blk, C_in) window covering the dilated receptive field.
        win = jnp.concatenate([xa_ref[b], xb_ref[b]], axis=0)
        # im2col-lite: fuse the K dilated taps into one contraction dim.
        cols = [win[k * dilation:k * dilation + t_tile, :]
                for k in range(kernel_size)]
        xc = cols[0] if kernel_size == 1 else jnp.concatenate(cols, axis=-1)
        # Single MXU matmul per batch: (t_tile, K*C_in) @ (K*C_in, C_out).
        acc = jnp.dot(xc, w_ref[...], preferred_element_type=jnp.float32)
        outs.append(acc + b_ref[...])                  # f32 bias epilogue
    out = outs[0] if b_sz == 1 else jnp.concatenate(outs, axis=-1)
    o_ref[...] = out.astype(o_ref.dtype)


def dila_conv1_pallas(x, weight, bias, *, dilation, kernel_size, t_tile=512):
    """x: (B, T, C_in); weight: (C_out, C_in, K) [PyTorch Conv1d layout];
    bias: (C_out,).  Returns (T_out, B, C_out), matching the PyTorch module."""
    b_sz, t_len, c_in = x.shape
    c_out = weight.shape[0]
    halo = dilation * (kernel_size - 1)
    t_out = t_len - halo
    assert t_out > 0, "kernel does not cover the input"

    # Halo block: smallest sublane-aligned block covering the receptive-field
    # overhang.  t_tile must be a multiple of h_blk so the halo's element
    # offset (t+1)*t_tile is expressible as a block index of an h_blk-block.
    h_blk = _round_up(max(halo, 1), 8)
    t_tile = max(h_blk, _round_up(min(t_tile, t_out), h_blk))
    nt = pl.cdiv(t_out, t_tile)
    ratio = t_tile // h_blk
    halo_blk_max = pl.cdiv(t_len, h_blk) - 1      # last in-bounds h_blk block

    # Weight (C_out, C_in, K) -> (K*C_in, C_out): row k*C_in + ci multiplies
    # input channel ci of tap k, matching the in-kernel im2col concat order.
    w_kc = jnp.transpose(weight, (2, 1, 0)).reshape(kernel_size * c_in, c_out)
    bias2d = bias.reshape(1, c_out)

    def halo_index_map(t):
        # Element offset (t+1)*t_tile, in units of h_blk, clamped to the last
        # in-bounds block.  Whenever the clamp fires, those rows only feed
        # output rows >= T_out which Pallas masks on writeback.
        return (0, jnp.minimum((t + 1) * ratio, halo_blk_max), 0)

    kernel = functools.partial(_dila_conv1_kernel, dilation=dilation,
                               kernel_size=kernel_size)

    out_flat = pl.pallas_call(
        kernel,
        out_shape=jax.ShapeDtypeStruct((t_out, b_sz * c_out), x.dtype),
        grid_spec=pltpu.PrefetchScalarGridSpec(
            num_scalar_prefetch=0,
            grid=(nt,),
            in_specs=[
                pl.BlockSpec((b_sz, t_tile, c_in), lambda t: (0, t, 0)),
                pl.BlockSpec((b_sz, h_blk, c_in), halo_index_map),
                pl.BlockSpec((kernel_size * c_in, c_out), lambda t: (0, 0)),
                pl.BlockSpec((1, c_out), lambda t: (0, 0)),
            ],
            out_specs=pl.BlockSpec((t_tile, b_sz * c_out), lambda t: (t, 0)),
        ),
        compiler_params=pltpu.CompilerParams(
            dimension_semantics=("parallel",)),
    )(x, x, w_kc, bias2d)

    # (T_out, B*C_out) -> (T_out, B, C_out): free reshape, no extra HBM pass
    # (PyTorch: out.permute(2, 0, 1) layout is written directly by the kernel).
    return out_flat.reshape(t_out, b_sz, c_out)


def dila_conv1_ref(x, weight, bias, *, dilation, kernel_size):
    """Pure-JAX reference using lax.conv_general_dilated (NCW layout)."""
    x_ncw = jnp.transpose(x, (0, 2, 1))            # (B, C_in, T)
    out = jax.lax.conv_general_dilated(
        x_ncw, weight,
        window_strides=(1,),
        padding="VALID",
        rhs_dilation=(dilation,),
        dimension_numbers=("NCH", "OIH", "NCH"),
    )                                              # (B, C_out, T_out)
    out = out + bias[None, :, None]
    return jnp.transpose(out, (2, 0, 1))           # (T_out, B, C_out)


def _run_case(b_sz, t_len, c_in, c_out, dilation, ksize, t_tile, key):
    kx, kw, kb = jax.random.split(key, 3)
    x = jax.random.normal(kx, (b_sz, t_len, c_in), dtype=jnp.float32)
    fan_in = c_in * ksize
    bound = 1.0 / (fan_in ** 0.5)
    weight = jax.random.uniform(kw, (c_out, c_in, ksize), jnp.float32,
                                minval=-bound, maxval=bound)
    bias = jax.random.uniform(kb, (c_out,), jnp.float32,
                              minval=-bound, maxval=bound)

    out = dila_conv1_pallas(x, weight, bias, dilation=dilation,
                            kernel_size=ksize, t_tile=t_tile)
    out = jax.block_until_ready(out)
    ref = dila_conv1_ref(x, weight, bias, dilation=dilation,
                         kernel_size=ksize)

    t_out = t_len - dilation * (ksize - 1)
    assert out.shape == (t_out, b_sz, c_out), out.shape
    err = float(jnp.max(jnp.abs(out - ref)))
    assert jnp.allclose(out, ref, atol=2e-5, rtol=2e-5), err


if __name__ == "__main__":
    key = jax.random.PRNGKey(0)
    k1, k2 = jax.random.split(key)

    # Small config matching the module's forward (B=2, T=16, c_in=4, c_out=8).
    _run_case(2, 16, 4, 8, 2, 3, 512, k1)
    # Multi-tile config: exercises the T_out tiling, the halo BlockSpec across
    # tile boundaries, and a partial last tile.
    _run_case(2, 300, 4, 8, 2, 3, 64, k2)

    print("KERNEL_OK")
</pallas_src>

<mosaic_0001>
module attributes {stable_mosaic.version = 11 : i64} {
  func.func @_dila_conv1_kernel(%arg0: i32, %arg1: memref<2x16x4xf32, #tpu.memory_space<vmem>>, %arg2: memref<2x8x4xf32, #tpu.memory_space<vmem>>, %arg3: memref<12x8xf32, #tpu.memory_space<vmem>>, %arg4: memref<1x8xf32, #tpu.memory_space<vmem>>, %arg5: memref<16x16xf32, #tpu.memory_space<vmem>>) attributes {dimension_semantics = [#tpu.dimension_semantics<parallel>], iteration_bounds = array<i64: 1>, scalar_prefetch = 0 : i64, scratch_operands = 0 : i64, tpu.core_type = #tpu.core_type<tc>, window_params = [{transform_indices = @transform_0, window_bounds = array<i64: 2, 16, 4>}, {transform_indices = @transform_1, window_bounds = array<i64: 2, 8, 4>}, {pipeline_mode = #tpu.pipeline_mode<synchronous>, transform_indices = @transform_2, window_bounds = array<i64: 12, 8>}, {pipeline_mode = #tpu.pipeline_mode<synchronous>, transform_indices = @transform_3, window_bounds = array<i64: 1, 8>}, {transform_indices = @transform_4, window_bounds = array<i64: 16, 16>}]} {
    %c0 = arith.constant 0 : index
    %c0_0 = arith.constant 0 : index
    %c0_1 = arith.constant 0 : index
    %0 = vector.load %arg1[%c0, %c0_0, %c0_1] : memref<2x16x4xf32, #tpu.memory_space<vmem>>, vector<1x16x4xf32>
    %1 = vector.shape_cast %0 : vector<1x16x4xf32> to vector<16x4xf32>
    %c0_2 = arith.constant 0 : index
    %c0_3 = arith.constant 0 : index
    %c0_4 = arith.constant 0 : index
    %2 = vector.load %arg2[%c0_2, %c0_3, %c0_4] : memref<2x8x4xf32, #tpu.memory_space<vmem>>, vector<1x8x4xf32>
    %3 = vector.shape_cast %2 : vector<1x8x4xf32> to vector<8x4xf32>
    %4 = tpu.concatenate %1, %3 in 0 : vector<16x4xf32>, vector<8x4xf32> -> vector<24x4xf32>
    %5 = vector.extract_strided_slice %4 {offsets = [0, 0], sizes = [16, 4], strides = [1, 1]} : vector<24x4xf32> to vector<16x4xf32>
    %6 = vector.extract_strided_slice %4 {offsets = [2, 0], sizes = [16, 4], strides = [1, 1]} : vector<24x4xf32> to vector<16x4xf32>
    %7 = vector.extract_strided_slice %4 {offsets = [4, 0], sizes = [16, 4], strides = [1, 1]} : vector<24x4xf32> to vector<16x4xf32>
    %8 = tpu.concatenate %5, %6, %7 in 1 : vector<16x4xf32>, vector<16x4xf32>, vector<16x4xf32> -> vector<16x12xf32>
    %c0_5 = arith.constant 0 : index
    %c0_6 = arith.constant 0 : index
    %9 = vector.load %arg3[%c0_5, %c0_6] : memref<12x8xf32, #tpu.memory_space<vmem>>, vector<12x8xf32>
    %cst = arith.constant dense<0.000000e+00> : vector<16x8xf32>
    %10 = tpu.matmul %8, %9, %cst {dimension_numbers = #tpu.dot_dimension_numbers<[1], [0], [0], [1], [0, 0, 1, 1], [], []>} : vector<16x12xf32>, vector<12x8xf32>, vector<16x8xf32> -> vector<16x8xf32>
    %c0_7 = arith.constant 0 : index
    %c0_8 = arith.constant 0 : index
    %11 = vector.load %arg4[%c0_7, %c0_8] : memref<1x8xf32, #tpu.memory_space<vmem>>, vector<1x8xf32>
    %12 = vector.broadcast %11 : vector<1x8xf32> to vector<16x8xf32>
    %13 = arith.addf %10, %12 : vector<16x8xf32>
    %c1 = arith.constant 1 : index
    %c0_9 = arith.constant 0 : index
    %c0_10 = arith.constant 0 : index
    %14 = vector.load %arg1[%c1, %c0_9, %c0_10] : memref<2x16x4xf32, #tpu.memory_space<vmem>>, vector<1x16x4xf32>
    %15 = vector.shape_cast %14 : vector<1x16x4xf32> to vector<16x4xf32>
    %c1_11 = arith.constant 1 : index
    %c0_12 = arith.constant 0 : index
    %c0_13 = arith.constant 0 : index
    %16 = vector.load %arg2[%c1_11, %c0_12, %c0_13] : memref<2x8x4xf32, #tpu.memory_space<vmem>>, vector<1x8x4xf32>
    %17 = vector.shape_cast %16 : vector<1x8x4xf32> to vector<8x4xf32>
    %18 = tpu.concatenate %15, %17 in 0 : vector<16x4xf32>, vector<8x4xf32> -> vector<24x4xf32>
    %19 = vector.extract_strided_slice %18 {offsets = [0, 0], sizes = [16, 4], strides = [1, 1]} : vector<24x4xf32> to vector<16x4xf32>
    %20 = vector.extract_strided_slice %18 {offsets = [2, 0], sizes = [16, 4], strides = [1, 1]} : vector<24x4xf32> to vector<16x4xf32>
    %21 = vector.extract_strided_slice %18 {offsets = [4, 0], sizes = [16, 4], strides = [1, 1]} : vector<24x4xf32> to vector<16x4xf32>
    %22 = tpu.concatenate %19, %20, %21 in 1 : vector<16x4xf32>, vector<16x4xf32>, vector<16x4xf32> -> vector<16x12xf32>
    %c0_14 = arith.constant 0 : index
    %c0_15 = arith.constant 0 : index
    %23 = vector.load %arg3[%c0_14, %c0_15] : memref<12x8xf32, #tpu.memory_space<vmem>>, vector<12x8xf32>
    %cst_16 = arith.constant dense<0.000000e+00> : vector<16x8xf32>
    %24 = tpu.matmul %22, %23, %cst_16 {dimension_numbers = #tpu.dot_dimension_numbers<[1], [0], [0], [1], [0, 0, 1, 1], [], []>} : vector<16x12xf32>, vector<12x8xf32>, vector<16x8xf32> -> vector<16x8xf32>
    %c0_17 = arith.constant 0 : index
    %c0_18 = arith.constant 0 : index
    %25 = vector.load %arg4[%c0_17, %c0_18] : memref<1x8xf32, #tpu.memory_space<vmem>>, vector<1x8xf32>
    %26 = vector.broadcast %25 : vector<1x8xf32> to vector<16x8xf32>
    %27 = arith.addf %24, %26 : vector<16x8xf32>
    %28 = tpu.concatenate %13, %27 in 1 : vector<16x8xf32>, vector<16x8xf32> -> vector<16x16xf32>
    %c0_19 = arith.constant 0 : index
    %c0_20 = arith.constant 0 : index
    %29 = vector.load %arg5[%c0_19, %c0_20] : memref<16x16xf32, #tpu.memory_space<vmem>>, vector<16x16xf32>
    tpu.vector_store %arg5[%c0_19, %c0_20], %28 {strides = array<i32>} : memref<16x16xf32, #tpu.memory_space<vmem>>, vector<16x16xf32>,
    return
  }
  func.func @transform_0(%arg0: i32) -> (i32, i32, i32) {
    %c0_i32 = arith.constant 0 : i32
    %c0_i32_0 = arith.constant 0 : i32
    %c0_i32_1 = arith.constant 0 : i32
    return %c0_i32, %arg0, %c0_i32_0 : i32, i32, i32
  }
  func.func @transform_1(%arg0: i32) -> (i32, i32, i32) {
    %c1_i32 = arith.constant 1 : i32
    %0 = arith.addi %arg0, %c1_i32 : i32
    %c2_i32 = arith.constant 2 : i32
    %1 = arith.muli %0, %c2_i32 : i32
    %c1_i32_0 = arith.constant 1 : i32
    %2 = arith.minsi %1, %c1_i32_0 : i32
    %c0_i32 = arith.constant 0 : i32
    %c0_i32_1 = arith.constant 0 : i32
    %c0_i32_2 = arith.constant 0 : i32
    return %c0_i32, %2, %c0_i32_1 : i32, i32, i32
  }
  func.func @transform_2(%arg0: i32) -> (i32, i32) {
    %c0_i32 = arith.constant 0 : i32
    %c0_i32_0 = arith.constant 0 : i32
    %c0_i32_1 = arith.constant 0 : i32
    return %c0_i32, %c0_i32_0 : i32, i32
  }
  func.func @transform_3(%arg0: i32) -> (i32, i32) {
    %c0_i32 = arith.constant 0 : i32
    %c0_i32_0 = arith.constant 0 : i32
    %c0_i32_1 = arith.constant 0 : i32
    return %c0_i32, %c0_i32_0 : i32, i32
  }
  func.func @transform_4(%arg0: i32) -> (i32, i32) {
    %c0_i32 = arith.constant 0 : i32
    %c0_i32_0 = arith.constant 0 : i32
    return %arg0, %c0_i32 : i32, i32
  }
}

</mosaic_0001>

<bundles_post_ra>
// kernel: tpu_custom_call.1
= control target key start
LH: loop header
LB: loop body
LE: loop exit
PB: predicated region body
PF: predicated region fallthrough
CT: control target
= control target key end

     0   :  { %vm72_vm0 = vcmask 1045504   ;;  %vm84_vm1 = vcmask 1043456   ;;  %s420_s5 = smov 4   ;;  %s421_s6 = smov 8   ;;  %s519_s0 = inlined_call_operand.vmem [shape: f32[2,16,4], index: 0, kind: input, shape index: {}]   ;;  %s520_s1 = inlined_call_operand.vmem [shape: f32[2,16,4], index: 1, kind: input, shape index: {}]   ;;  %s521_s2 = inlined_call_operand.vmem [shape: f32[12,8], index: 2, kind: input, shape index: {}]   ;;  %s522_s3 = inlined_call_operand.vmem [shape: f32[1,8], index: 3, kind: input, shape index: {}]   ;;  %s523_s4 = inlined_call_operand.hbm [shape: f32[12,16], index: 4, kind: output, shape index: {}]  }
   0x1   :  { %v352_v0 = vld [vmem:[%s519_s0 + $0x10] sm:$0xff]  ;;  %v353_v1 = vld [vmem:[%s519_s0 + $0x18] sm:$0xff]  ;;  %v66_v7 = vld [vmem:[%s519_s0] sm:$0xff] }
   0x2   :  { %v204_v2 = vrot.slane %v352_v0, 2  ;;  %v205_v3 = vrot.slane %v353_v1, 2  ;;  %v215_v4 = vrot.slane %v352_v0, 4  ;;  %v216_v5 = vrot.slane %v353_v1, 4  ;;  %v347_v6 = vld [vmem:[%s520_s1 + $0x18] sm:$0xff]  ;;  %v67_v10 = vld [vmem:[%s519_s0 + $0x8] sm:$0xff] }
   0x3   :  { %v207_v8 = vrot.slane %v347_v6, 2  ;;  %v218_v9 = vrot.slane %v347_v6, 4  ;;  %v346_v11 = vld [vmem:[%s520_s1 + $0x8] sm:$0xff]  ;;  %v102_v14 = vld [vmem:[%s521_s2] sm:$0xff]  ;;  %v73_v16 = vrot.slane %v66_v7, 2  ;;  %v74_v17 = vrot.slane %v67_v10, 2 }
   0x4   :  { %v206_v12 = vsel %vm72_vm0, %v204_v2, %v205_v3  ;;  %v217_v13 = vsel %vm84_vm1, %v215_v4, %v216_v5  ;;  %v103_v15 = vld [vmem:[%s521_s2 + $0x8] sm:$0xf] }
   0x5   :  { %209 = vrot.lane.b32.xlu0 %v206_v12, %s420_s5  ;;  %220 = vrot.lane.b32.xlu1 %v217_v13, %s421_s6 }
   0x6   :  { %9 = vsyncpa [#allocation4], 0  ;;  %v208_v18 = vsel %vm72_vm0, %v205_v3, %v207_v8  ;;  %v219_v19 = vsel %vm84_vm1, %v216_v5, %v218_v9  ;;  %v76_v20 = vrot.slane %v346_v11, 2  ;;  %v379_v21 = vpack.c.bf16 %v103_v15, %v102_v14  ;;  %v348_v45 = vld [vmem:[%s522_s3] ss:$0 sm:$0xff]  ;;  %s423_s2 = smov [#allocation3]  }
   0x7   :  { %vm422_vm2 = vmmov 1   ;;  %v85_v22 = vrot.slane %v66_v7, 4  ;;  %v75_v23 = vsel %vm72_vm0, %v73_v16, %v74_v17  ;;  %v86_v25 = vrot.slane %v67_v10, 4  ;;  %s329_s7 = sshll.u32 %s423_s2, 4  ;;  %s330_s7 = int_to_ptr.vmem [resolvable:$true] %s329_s7 }
   0x8   :  { %vm380_vm3 = vmpackc.low %vm84_vm1, %vm422_vm2  ;;  %v77_v24 = vsel %vm72_vm0, %v74_v17, %v76_v20  ;;  %v88_v26 = vrot.slane %v346_v11, 4  ;;  %vm96_vm4 = vcmask 31744   ;;  %vm99_vm5 = vcmask 64512   ;;  %s396_s3 = scalar_lea.vmem %s330_s7, 256  ;;  %p401_p1 = scmp.lt.s32.totalorder %s330_s7, %s330_s7 }
   0x9   :  { %211 = vrot.lane.b32.xlu0 %v208_v18, %s420_s5  ;;  %222 = vrot.lane.b32.xlu1 %v219_v19, %s421_s6  ;;  %v87_v27 = vsel %vm84_vm1, %v85_v22, %v86_v25  ;;  %vm111_vm6 = vcmask 97280   ;;  %vm321_vm7 = vcmask 130048   ;;  %p397_p0 = scmp.ne.s32.totalorder %s330_s7, %s396_s3  ;;  %p402_p2 = scmp.lt.s32.totalorder %s396_s3, %s396_s3 }
   0xa   :  { %387 = vmatprep.subr.msk.bf16.mxu1 %vm380_vm3, %v379_v21  ;;  %381 = vmatprep.subr.msk.bf16.mxu0 %vm380_vm3, %v379_v21  ;;  %v89_v28 = vsel %vm84_vm1, %v86_v25, %v88_v26 }
   0xb   :  { %390 = vmatpush3.bf16.msk.msra.mxu1 %vm380_vm3, %v379_v21  ;;  %384 = vmatpush3.bf16.msk.msra.mxu0 %vm380_vm3, %v379_v21  ;;  %p403_p3 = por %p402_p2, %p401_p1 }
   0xd   :  { %78 = vrot.lane.b32.xlu0 %v75_v23, %s420_s5  ;;  %80 = vrot.lane.b32.xlu1 %v77_v24, %s420_s5  ;;  %p404_p4 = pnand %p403_p3, %p397_p0 }
  0x11   :  { %90 = vrot.lane.b32.xlu0 %v87_v27, %s421_s6  ;;  %92 = vrot.lane.b32.xlu1 %v89_v28, %s421_s6 }
  0x77   :  { %v210_v29 = vpop.permute.xlu0 %209  ;;  %v221_v30 = vpop.permute.xlu1 %220 }
  0x78   :  { %v226_v31 = vsel %vm96_vm4, %v352_v0, %v210_v29 }
  0x79   :  { %v228_v32 = vsel %vm99_vm5, %v226_v31, %v221_v30 }
  0x7a   :  { %376 = vmatprep.mubr.msk.f32.mxu1 %vm111_vm6, %v228_v32 }
  0x7b   :  { %v212_v33 = vpop.permute.xlu0 %211  ;;  %v223_v34 = vpop.permute.xlu1 %222 }
  0x7c   :  { %v227_v35 = vsel %vm96_vm4, %v353_v1, %v212_v33 }
  0x7d   :  { %v229_v36 = vsel %vm99_vm5, %v227_v35, %v223_v34 }
  0x7e   :  { %377 = vmatmul.mubr.msk.f32.vlgmr.msra.gmra.mrb[0].mxu1 %vm111_vm6, %v229_v36 }
  0x7f   :  { %v79_v37 = vpop.permute.xlu0 %78  ;;  %v81_v38 = vpop.permute.xlu1 %80 }
  0x80   :  { %v97_v39 = vsel %vm96_vm4, %v66_v7, %v79_v37  ;;  %v98_v40 = vsel %vm96_vm4, %v67_v10, %v81_v38 }
  0x83   :  { %v91_v41 = vpop.permute.xlu0 %90  ;;  %v93_v42 = vpop.permute.xlu1 %92 }
  0x84   :  { %v101_v43 = vsel %vm99_vm5, %v98_v40, %v93_v42  ;;  %v100_v44 = vsel %vm99_vm5, %v97_v39, %v91_v41 }
  0x85   :  { %369 = vmatprep.mubr.msk.f32.mxu0 %vm111_vm6, %v100_v44 }
  0x86   :  { %370 = vmatmul.mubr.msk.f32.vlgmr.msra.gmra.mrb[0].mxu0 %vm111_vm6, %v101_v43 }
 0x151   :  { %v378_v46 = vpop.f32.mrb[0].mxu1 }
 0x152   :  { %v308_v47 = vadd.f32 %v378_v46, %v348_v45  ;;  %v302_v48 = vpop.f32.mrb[1].mxu1 }
 0x153   :  { %v303_v49 = vadd.f32 %v348_v45, %v302_v48 }
 0x154   :  { %315 = vrot.lane.b32.xlu1 %v308_v47, %s421_s6 }
 0x155   :  { %313 = vrot.lane.b32.xlu0 %v303_v49, %s421_s6 }
 0x159   :  { %v371_v50 = vpop.f32.mrb[0].mxu0 }
 0x15a   :  { %v193_v51 = vadd.f32 %v371_v50, %v348_v45  ;;  %v187_v52 = vpop.f32.mrb[1].mxu0 }
 0x15b   :  { %v188_v53 = vadd.f32 %v348_v45, %v187_v52 }
 0x1c6   :  { %v316_v54 = vpop.permute.xlu1 %315 }
 0x1c7   :  { %v320_v55 = vsel %vm99_vm5, %v193_v51, %v316_v54  ;;  %v314_v56 = vpop.permute.xlu0 %313 }
 0x1c8   :  { %323 = vst.msk [vmem:[#allocation3 + $0x8] sm:$0xff] %vm321_vm7, %v320_v55  ;;  %v319_v57 = vsel %vm99_vm5, %v188_v53, %v314_v56 }
 0x1c9   :  { %322 = vst.msk [vmem:[#allocation3] sm:$0xff] %vm321_vm7, %v319_v57 }
 0x1ca   :  { %407 = shalt.err (!%p404_p4)
}
 0x1cb   :  { %s408_s10 = scalar_lea.hbm %s523_s4, 256 }
 0x1cc   :  { %p409_p5 = scmp.ne.s32.totalorder %s523_s4, %s408_s10  ;;  %p412_p6 = scmp.lt.u32.totalorder %s408_s10, %s523_s4 }
 0x1ce   :  { %p414_p7 = pnand %p412_p6, %p409_p5 }
 0x1d0   :  { %417 = shalt.err (!%p414_p7)
}
 0x1d1   :  { %s424_s15 = smov 128  }
 0x1d2   :  { %335 = dma.vmem_to_hbm [thread:$0]  %s330_s7, 256, %s523_s4, [#allocation4], %s424_s15, %s424_s15, %s421_s6  }
 0x1d3   :  { %418 = dma.done.wait [#allocation4], 256  }
 0x1d4   :  { %419 = vsyncadd [#allocation4], 4294967040 }
 0x1d5   :  { %339 = vsyncpa [#allocation4], 1 }

</bundles_post_ra>
